<compile_context>
chip_gen: v5e
topology: v5e:2x2
jax: 0.10.0
libtpu: 0.0.40
codegen_flags: <defaults>
</compile_context>

<pallas_src>
import functools
import math

import jax
import jax.numpy as jnp
from jax import lax
from jax.experimental import pallas as pl
from jax.experimental.pallas import tpu as pltpu


def _round_up(x: int, m: int) -> int:
    return (x + m - 1) // m * m


# --------------------------------------------------------------------------
# Fast path: whole table resident in VMEM, gather via one-hot MXU matmul.
# --------------------------------------------------------------------------
def _onehot_kernel(ids_ref, table_ref, out_ref, *, vocab, scale):
    # ids_ref:   (T, 1) int32   token ids for this tile
    # table_ref: (V, D)         full embedding table (resident across the grid)
    # out_ref:   (T, D)         dense output tile
    tok = ids_ref[...]                                            # (T, 1)
    col = lax.broadcasted_iota(jnp.int32, (tok.shape[0], vocab), 1)
    onehot = (tok == col).astype(table_ref.dtype)                 # (T, V)
    rows = jnp.dot(onehot, table_ref[...],
                   preferred_element_type=jnp.float32)            # (T, D)
    out_ref[...] = (rows * scale).astype(out_ref.dtype)


def _embeddings_vmem_table(flat_ids, table, *, tile):
    n = flat_ids.shape[0]
    v, d = table.shape
    n_pad = _round_up(n, tile)
    ids2d = jnp.pad(flat_ids, (0, n_pad - n)).reshape(n_pad, 1)
    scale = float(math.sqrt(d))
    kernel = functools.partial(_onehot_kernel, vocab=v, scale=scale)

    out = pl.pallas_call(
        kernel,
        out_shape=jax.ShapeDtypeStruct((n_pad, d), table.dtype),
        grid_spec=pltpu.PrefetchScalarGridSpec(
            num_scalar_prefetch=0,
            grid=(n_pad // tile,),
            in_specs=[
                pl.BlockSpec((tile, 1), lambda g: (g, 0)),   # ids tile
                pl.BlockSpec((v, d), lambda g: (0, 0)),      # full table, loaded once
            ],
            out_specs=pl.BlockSpec((tile, d), lambda g: (g, 0)),
        ),
        compiler_params=pltpu.CompilerParams(
            dimension_semantics=("parallel",),               # v7x: shard tokens over 2 TCs
            vmem_limit_bytes=48 * 1024 * 1024,               # sized for v7x (64 MiB phys)
        ),
    )(ids2d, table)
    return out[:n]


# --------------------------------------------------------------------------
# Fallback path: table in HBM, manual per-row DMA gather into VMEM scratch.
# --------------------------------------------------------------------------
def _gather_kernel(ids_smem, table_hbm, out_ref, rows_vmem, sem, *, tile, scale):
    # ids_smem:  (N_pad,) int32 in SMEM (scalar prefetch)
    # table_hbm: (V, D) raw HBM ref (memory_space=pl.ANY)
    # out_ref:   (T, D) dense output tile
    # rows_vmem: (T, D) VMEM scratch
    # sem:       single DMA semaphore (accumulates all T copies)
    base = pl.program_id(0) * tile

    # Issue T small row-gather DMAs. Fully unrolled at trace time so the
    # scheduler can overlap descriptor issue with the scale/store epilogue.
    for t in range(tile):
        tok = ids_smem[base + t]
        pltpu.make_async_copy(
            table_hbm.at[pl.ds(tok, 1), :],
            rows_vmem.at[pl.ds(t, 1), :],
            sem,
        ).start()

    # Drain: one same-sized wait per issued copy on the shared semaphore.
    for _ in range(tile):
        pltpu.make_async_copy(
            table_hbm.at[pl.ds(0, 1), :],
            rows_vmem.at[pl.ds(0, 1), :],
            sem,
        ).wait()

    out_ref[...] = (rows_vmem[...].astype(jnp.float32) * scale).astype(out_ref.dtype)


def _embeddings_hbm_gather(flat_ids, table, *, tile):
    n = flat_ids.shape[0]
    v, d = table.shape
    n_pad = _round_up(n, tile)
    ids_pad = jnp.pad(flat_ids, (0, n_pad - n))
    scale = float(math.sqrt(d))
    kernel = functools.partial(_gather_kernel, tile=tile, scale=scale)

    out = pl.pallas_call(
        kernel,
        out_shape=jax.ShapeDtypeStruct((n_pad, d), table.dtype),
        grid_spec=pltpu.PrefetchScalarGridSpec(
            num_scalar_prefetch=1,                            # ids -> SMEM
            grid=(n_pad // tile,),
            in_specs=[pl.BlockSpec(memory_space=pl.ANY)],     # table stays in HBM
            out_specs=pl.BlockSpec((tile, d), lambda g, ids: (g, 0)),
            scratch_shapes=[
                pltpu.VMEM((tile, d), table.dtype),
                pltpu.SemaphoreType.DMA,
            ],
        ),
        compiler_params=pltpu.CompilerParams(
            dimension_semantics=("parallel",),
            vmem_limit_bytes=32 * 1024 * 1024,
        ),
    )(ids_pad, table)
    return out[:n]


# --------------------------------------------------------------------------
# Public wrapper.
# --------------------------------------------------------------------------
def embeddings_forward(ids, table, *, tokens_per_tile=256,
                       vmem_table_budget_bytes=4 * 1024 * 1024,
                       force_hbm_gather=False):
    """ids: (B, S) int32; table: (V, D). Returns (B, S, D) = table[ids]*sqrt(D)."""
    b, s = ids.shape
    v, d = table.shape
    n = b * s
    # Clamp ids so an out-of-range id can never drive a bad gather.
    flat_ids = jnp.clip(ids.reshape(n).astype(jnp.int32), 0, v - 1)

    # Token tile: multiple of 8 (sublane), capped so tiny inputs are not padded
    # to a huge tile. On v7x larger tiles (512) feed the 3.2 TB/s HBM better.
    tile = max(8, min(int(tokens_per_tile), _round_up(n, 8)))

    table_bytes = v * d * table.dtype.itemsize
    if (not force_hbm_gather) and table_bytes <= vmem_table_budget_bytes:
        out_flat = _embeddings_vmem_table(flat_ids, table, tile=tile)
    else:
        out_flat = _embeddings_hbm_gather(flat_ids, table, tile=min(tile, 128))
    return out_flat.reshape(b, s, d)


if __name__ == "__main__":
    model_dim = 128
    vocab = 50
    batch, seq = 2, 8

    key = jax.random.PRNGKey(0)
    k_tab, k_ids = jax.random.split(key)

    # nn.Embedding weight ~ N(0, 1); deterministic synthetic init.
    table = jax.random.normal(k_tab, (vocab, model_dim), dtype=jnp.float32)
    ids = jax.random.randint(k_ids, (batch, seq), 0, vocab, dtype=jnp.int32)

    ref = table[ids] * jnp.float32(math.sqrt(model_dim))

    # Fast path (table fits in VMEM -> one-hot MXU gather).
    out_fast = jax.block_until_ready(embeddings_forward(ids, table))
    assert out_fast.shape == (batch, seq, model_dim)
    assert jnp.allclose(out_fast, ref, atol=1e-5, rtol=1e-5)

    # Fallback path (table kept in HBM, manual per-row DMA gather).
    out_gather = jax.block_until_ready(
        embeddings_forward(ids, table, force_hbm_gather=True))
    assert jnp.allclose(out_gather, ref, atol=1e-5, rtol=1e-5)

    print("KERNEL_OK")
</pallas_src>

<mosaic_0001>
module attributes {stable_mosaic.version = 11 : i64} {
  func.func @_onehot_kernel(%arg0: i32, %arg1: memref<16x1xi32, #tpu.memory_space<vmem>>, %arg2: memref<50x128xf32, #tpu.memory_space<vmem>>, %arg3: memref<16x128xf32, #tpu.memory_space<vmem>>) attributes {dimension_semantics = [#tpu.dimension_semantics<parallel>], iteration_bounds = array<i64: 1>, scalar_prefetch = 0 : i64, scratch_operands = 0 : i64, tpu.core_type = #tpu.core_type<tc>, window_params = [{transform_indices = @transform_0, window_bounds = array<i64: 16, 1>}, {pipeline_mode = #tpu.pipeline_mode<synchronous>, transform_indices = @transform_1, window_bounds = array<i64: 50, 128>}, {transform_indices = @transform_2, window_bounds = array<i64: 16, 128>}]} {
    %c0 = arith.constant 0 : index
    %c0_0 = arith.constant 0 : index
    %0 = vector.load %arg1[%c0, %c0_0] : memref<16x1xi32, #tpu.memory_space<vmem>>, vector<16x1xi32>
    %1 = tpu.iota {dimensions = array<i32: 1>} : vector<16x50xi32>
    %2 = vector.broadcast %0 : vector<16x1xi32> to vector<16x50xi32>
    %3 = arith.cmpi eq, %2, %1 : vector<16x50xi32>
    %4 = arith.extui %3 : vector<16x50xi1> to vector<16x50xi32>
    %5 = arith.sitofp %4 : vector<16x50xi32> to vector<16x50xf32>
    %c0_1 = arith.constant 0 : index
    %c0_2 = arith.constant 0 : index
    %6 = vector.load %arg2[%c0_1, %c0_2] : memref<50x128xf32, #tpu.memory_space<vmem>>, vector<50x128xf32>
    %cst = arith.constant dense<0.000000e+00> : vector<16x128xf32>
    %7 = tpu.matmul %5, %6, %cst {dimension_numbers = #tpu.dot_dimension_numbers<[1], [0], [0], [1], [0, 0, 1, 1], [], []>} : vector<16x50xf32>, vector<50x128xf32>, vector<16x128xf32> -> vector<16x128xf32>
    %cst_3 = arith.constant 11.3137083 : f32
    %8 = vector.broadcast %cst_3 : f32 to vector<16x128xf32>
    %9 = arith.mulf %7, %8 : vector<16x128xf32>
    %c0_4 = arith.constant 0 : index
    %c0_5 = arith.constant 0 : index
    %10 = vector.load %arg3[%c0_4, %c0_5] : memref<16x128xf32, #tpu.memory_space<vmem>>, vector<16x128xf32>
    tpu.vector_store %arg3[%c0_4, %c0_5], %9 {strides = array<i32>} : memref<16x128xf32, #tpu.memory_space<vmem>>, vector<16x128xf32>,
    return
  }
  func.func @transform_0(%arg0: i32) -> (i32, i32) {
    %c0_i32 = arith.constant 0 : i32
    %c0_i32_0 = arith.constant 0 : i32
    return %arg0, %c0_i32 : i32, i32
  }
  func.func @transform_1(%arg0: i32) -> (i32, i32) {
    %c0_i32 = arith.constant 0 : i32
    %c0_i32_0 = arith.constant 0 : i32
    %c0_i32_1 = arith.constant 0 : i32
    return %c0_i32, %c0_i32_0 : i32, i32
  }
  func.func @transform_2(%arg0: i32) -> (i32, i32) {
    %c0_i32 = arith.constant 0 : i32
    %c0_i32_0 = arith.constant 0 : i32
    return %arg0, %c0_i32 : i32, i32
  }
}

</mosaic_0001>

<bundles_post_ra>
// kernel: tpu_custom_call.1
= control target key start
LH: loop header
LB: loop body
LE: loop exit
PB: predicated region body
PF: predicated region fallthrough
CT: control target
= control target key end

     0   :  { %7 = vsyncpa [#allocation3], 0  ;;  %s218_s0 = inlined_call_operand.vmem [shape: s32[16,1], index: 0, kind: input, shape index: {}]   ;;  %s219_s1 = inlined_call_operand.hbm [shape: f32[50,128], index: 1, kind: input, shape index: {}]   ;;  %s220_s2 = inlined_call_operand.hbm [shape: f32[16,128], index: 2, kind: output, shape index: {}]  }
   0x1   :  { %8 = vsyncpa [#allocation4], 0  ;;  %s15_s11 = sshll.u32 %s219_s1, 4  ;;  %s179_s12 = smov [#allocation2]   ;;  %s16_s11 = int_to_ptr.hbm [resolvable:$true] %s15_s11 }
   0x2   :  { %s17_s13 = sshll.u32 %s179_s12, 4  ;;  %s180_s14 = smov 128   ;;  %s18_s13 = int_to_ptr.vmem [resolvable:$true] %s17_s13 }
   0x3   :  { %s181_s15 = smov 8  }
   0x4   :  { %23 = dma.hbm_to_vmem [thread:$0]  %s16_s11, 896, %s18_s13, [#allocation3], %s180_s14, %s180_s14, %s181_s15  }
   0x5   :  { %175 = dma.done.wait [#allocation3], 896  }
   0x6   :  { %176 = vsyncadd [#allocation3], 4294966400  ;;  %v182_v0 = vmov 0   ;;  %vm58_vm0 = vcmask 1041408   ;;  %v28_v1 = vld [vmem:[%s218_s0] sm:$0xff]  ;;  %v49_v3 = vld [vmem:[#allocation2 + $0x28] sm:$0xff]  ;;  %v30_v10 = vlaneseq }
   0x7   :  { %126 = vset.pattern.permute.xlu0 %v182_v0  ;;  %v50_v2 = vld [vmem:[#allocation2 + $0x30] sm:$0x3]  ;;  %v48_v4 = vld [vmem:[#allocation2 + $0x20] sm:$0xff]  ;;  %v47_v5 = vld [vmem:[#allocation2 + $0x18] sm:$0xff]  ;;  %vm51_vm1 = vcmask 408576   ;;  %v183_v13 = vmov 0.0  }
   0x8   :  { %33 = vperm.xlu0 %126, %v28_v1   ;;  %110 = vmatpush.msk.msra.mxu0 %vm58_vm0, %v50_v2  ;;  %v29_v6 = vld [vmem:[%s218_s0 + $0x8] sm:$0xff]  ;;  %v46_v7 = vld [vmem:[#allocation2 + $0x10] sm:$0xff]  ;;  %v44_v9 = vld [vmem:[#allocation2] sm:$0xff]  ;;  %v31_v11 = vand.u32 127, %v30_v10  ;;  %s184_s0 = smov [#allocation5]   ;;  %s95_s22 = sshll.u32 %s220_s2, 4  ;;  %s96_s22 = int_to_ptr.hbm [resolvable:$true] %s95_s22 }
   0x9   :  { %113 = vmatpush.msk.msra.mxu1 %vm58_vm0, %v50_v2  ;;  %v45_v8 = vld [vmem:[#allocation2 + $0x8] sm:$0xff]  ;;  %s93_s19 = sshll.u32 %s184_s0, 4  ;;  %s94_s19 = int_to_ptr.vmem [resolvable:$true] %s93_s19 }
   0xa   :  { %72 = vmatpush.msra.mxu0 %v49_v3 }
   0xb   :  { %114 = vmatpush.msra.mxu1 %v49_v3 }
   0xc   :  { %73 = vmatpush.msra.mxu0 %v48_v4 }
   0xd   :  { %115 = vmatpush.msra.mxu1 %v48_v4 }
   0xe   :  { %74 = vmatpush.msra.mxu0 %v47_v5 }
   0xf   :  { %116 = vmatpush.msra.mxu1 %v47_v5 }
  0x10   :  { %36 = vperm.xlu0 %126, %v29_v6   ;;  %75 = vmatpush.msra.mxu0 %v46_v7 }
  0x11   :  { %117 = vmatpush.msra.mxu1 %v46_v7 }
  0x12   :  { %76 = vmatpush.msra.mxu0 %v45_v8 }
  0x13   :  { %118 = vmatpush.msra.mxu1 %v45_v8 }
  0x14   :  { %77 = vmatpush.msra.mxu0 %v44_v9 }
  0x15   :  { %119 = vmatpush.msra.mxu1 %v44_v9 }
  0x7a   :  { %v34_v12 = vpop.permute.xlu0 %33 }
  0x7b   :  { %vm38_vm2 = vcmp.eq.s32.totalorder %v34_v12, %v31_v11 }
  0x7c   :  { %v108_v14 = vsel %vm38_vm2, 1.0, %v183_v13 }
  0x7d   :  { %111 = vmatmul.msk.f32.vlgmr.msra.gmra.mxu0 %vm51_vm1, %v108_v14 }
  0x82   :  { %v37_v15 = vpop.permute.xlu0 %36 }
  0x83   :  { %vm39_vm3 = vcmp.eq.s32.totalorder %v37_v15, %v31_v11 }
  0x84   :  { %v109_v16 = vsel %vm39_vm3, 1.0, %v183_v13 }
  0x85   :  { %112 = vmatmul.msk.f32.vlgmr.msra.gmra.mxu1 %vm51_vm1, %v109_v16 }
  0xfa   :  { %v79_v17 = vpop.f32.mrf.mxu0 }
  0xfb   :  { %v85_v18 = vmul.f32 11.313708, %v79_v17 }
  0xfd   :  { %87 = vst [vmem:[#allocation5] sm:$0xff] %v85_v18 }
 0x102   :  { %v82_v19 = vpop.f32.mrf.mxu1 }
 0x103   :  { %v86_v20 = vmul.f32 11.313708, %v82_v19 }
 0x105   :  { %88 = vst [vmem:[#allocation5 + $0x8] sm:$0xff] %v86_v20 }
 0x106   :  { %101 = dma.vmem_to_hbm [thread:$0]  %s94_s19, 256, %s96_s22, [#allocation4], %s180_s14, %s180_s14, %s181_s15  }
 0x107   :  { %177 = dma.done.wait [#allocation4], 256  }
 0x108   :  { %178 = vsyncadd [#allocation4], 4294967040 }
 0x109   :  { %106 = vsyncpa [#allocation3], 1 }
 0x10a   :  { %107 = vsyncpa [#allocation4], 1 }

</bundles_post_ra>
